<compile_context>
chip_gen: v5e
topology: v5e:2x2
jax: 0.10.0
libtpu: 0.0.40
codegen_flags: <defaults>
</compile_context>

<pallas_src>
import functools

import jax
import jax.numpy as jnp
from jax.experimental import pallas as pl
from jax.experimental.pallas import tpu as pltpu


def _combined_loss_kernel(logits_ref, targets_ref,
                          ce_ref, cnt_ref, inter_ref, union_ref,
                          *, ignore_index, hw, tile, tiles_per_split,
                          ragged, onehot_needs_mask):
    i = pl.program_id(2)

    @pl.when(i == 0)
    def _init():
        ce_ref[...] = jnp.zeros_like(ce_ref)
        cnt_ref[...] = jnp.zeros_like(cnt_ref)
        inter_ref[...] = jnp.zeros_like(inter_ref)
        union_ref[...] = jnp.zeros_like(union_ref)

    x = logits_ref[...].astype(jnp.float32)            # (C, TP)
    t = targets_ref[...].astype(jnp.int32)             # (1, TP)
    C, TP = x.shape

    if ragged:
        # Only emitted when no 128-multiple divisor of H*W exists (rare).
        s_idx = pl.program_id(1)
        base = (s_idx * tiles_per_split + i) * tile
        pix = base + jax.lax.broadcasted_iota(jnp.int32, (1, TP), 1)
        in_b = pix < hw
        t = jnp.where(in_b, t, jnp.int32(ignore_index))
        x = jnp.where(in_b, x, 0.0)                     # sanitize OOB garbage

    valid = t != ignore_index                           # (1, TP) bool
    validf = valid.astype(jnp.float32)

    # numerically-stable softmax over the class (sublane) axis
    m = jnp.max(x, axis=0, keepdims=True)               # (1, TP)
    e = jnp.exp(x - m)                                  # (C, TP)
    s = jnp.sum(e, axis=0, keepdims=True)               # (1, TP), >= 1
    inv = validf * pl.reciprocal(s)                     # exact; 1 row vs C divides
    p_m = e * inv                                       # masked softmax probs

    # boolean target mask instead of an f32 one-hot
    class_ids = jax.lax.broadcasted_iota(jnp.int32, (C, TP), 0)
    mask = class_ids == t                                # (C, TP) bool
    if onehot_needs_mask:                                # only if ignore_index < C
        mask = jnp.logical_and(mask, valid)

    # cross-entropy: nll = m + log(sum_exp) - x[target] for valid pixels
    sel_x = jnp.sum(jnp.where(mask, x, 0.0), axis=0, keepdims=True)  # (1, TP)
    nll = validf * (m + jnp.log(s) - sel_x)
    ce_ref[...] += jnp.sum(nll, keepdims=True)                       # (1, 1)
    cnt_ref[...] += jnp.sum(validf, keepdims=True)                   # (1, 1)

    # dice partials: lane reduction per step (XLU), accumulated into (C, 1)
    inter_ref[...] += jnp.sum(jnp.where(mask, p_m, 0.0),
                              axis=1, keepdims=True)
    union_ref[...] += jnp.sum(jnp.where(mask, p_m + 1.0, p_m),
                              axis=1, keepdims=True)


def _pick_tile(num_classes, hw, requested):
    """Largest lane tile that fits the VMEM working-set budget and, when
    possible, divides hw exactly (so no per-tile ragged masking)."""
    if requested is not None:
        t = min(int(requested), hw)
        if t < hw:
            t = max(128, (t // 128) * 128)
        return t
    # ~5 live (C, tile) f32 buffers: double-buffered logits input + x/e/p_m temps
    budget = 20 * 1024 * 1024
    cap = budget // max(1, num_classes * 4 * 5)
    cap = max(512, min(8192, cap))
    cap = (cap // 128) * 128
    if hw <= cap:
        return hw                       # single full-extent tile
    for t in range(cap, 127, -128):
        if hw % t == 0:
            return t                    # exact divisor: no ragged masking
    return cap                          # rare fallback: mask in-kernel


def combined_loss(logits, targets, *, ignore_index=255, smooth=1.0,
                  weight_ce=1.0, weight_dice=1.0, tile_pixels=None):
    """logits: (N, C, H, W) float (f32/bf16); targets: (N, H, W) int -> scalar."""
    N, C, H, W = logits.shape
    HW = H * W

    x = logits.reshape(N, C, HW)                    # free, contiguous
    t = targets.reshape(N, 1, HW)                   # native dtype, widened in-kernel

    tile = _pick_tile(C, HW, tile_pixels)
    num_tiles = pl.cdiv(HW, tile)
    ragged = (HW % tile) != 0
    # pixel-axis split so both v7x TensorCores stay busy for small / odd N
    splits = 2 if (num_tiles >= 2 and num_tiles % 2 == 0) else 1
    tiles_per_split = num_tiles // splits
    onehot_needs_mask = (0 <= ignore_index < C)

    kernel = functools.partial(
        _combined_loss_kernel,
        ignore_index=int(ignore_index), hw=HW, tile=tile,
        tiles_per_split=tiles_per_split, ragged=ragged,
        onehot_needs_mask=onehot_needs_mask)

    out_shapes = (
        jax.ShapeDtypeStruct((N, splits, 1, 1), jnp.float32),   # CE nll sum
        jax.ShapeDtypeStruct((N, splits, 1, 1), jnp.float32),   # valid count
        jax.ShapeDtypeStruct((N, splits, C, 1), jnp.float32),   # dice intersection
        jax.ShapeDtypeStruct((N, splits, C, 1), jnp.float32),   # dice union
    )

    ce_p, cnt_p, inter_p, union_p = pl.pallas_call(
        kernel,
        out_shape=out_shapes,
        grid_spec=pltpu.PrefetchScalarGridSpec(
            num_scalar_prefetch=0,
            grid=(N, splits, tiles_per_split),
            in_specs=[
                pl.BlockSpec((None, C, tile),
                             lambda n, s, i: (n, 0, s * tiles_per_split + i)),
                pl.BlockSpec((None, 1, tile),
                             lambda n, s, i: (n, 0, s * tiles_per_split + i)),
            ],
            out_specs=[
                pl.BlockSpec((None, None, 1, 1), lambda n, s, i: (n, s, 0, 0)),
                pl.BlockSpec((None, None, 1, 1), lambda n, s, i: (n, s, 0, 0)),
                pl.BlockSpec((None, None, C, 1), lambda n, s, i: (n, s, 0, 0)),
                pl.BlockSpec((None, None, C, 1), lambda n, s, i: (n, s, 0, 0)),
            ],
        ),
        compiler_params=pltpu.CompilerParams(
            dimension_semantics=("parallel", "parallel", "arbitrary"),
            vmem_limit_bytes=48 * 1024 * 1024),
    )(x, t)

    # tiny O(N*splits*C) combine outside the kernel
    ce = jnp.sum(ce_p) / jnp.sum(cnt_p)             # NaN iff every pixel ignored (matches ref)
    inter = jnp.sum(inter_p, axis=(0, 1))[:, 0]     # (C,)
    union = jnp.sum(union_p, axis=(0, 1))[:, 0]
    dice = (2.0 * inter + smooth) / (union + smooth)
    dice_loss = 1.0 - jnp.mean(dice)
    return weight_ce * ce + weight_dice * dice_loss


def _reference_combined_loss(logits, targets, *, ignore_index=255, smooth=1.0,
                             weight_ce=1.0, weight_dice=1.0):
    """Pure-JAX reference matching the PyTorch CombinedLoss semantics."""
    C = logits.shape[1]
    logits = logits.astype(jnp.float32)
    logp = jax.nn.log_softmax(logits, axis=1)
    p = jnp.exp(logp)
    valid = (targets != ignore_index)
    validf = valid.astype(jnp.float32)
    t_safe = jnp.where(valid, targets, 0)

    # cross-entropy with ignore_index (mean over valid pixels)
    nll = -jnp.take_along_axis(logp, t_safe[:, None], axis=1)[:, 0]
    ce = jnp.sum(nll * validf) / jnp.sum(validf)

    # dice
    onehot = jax.nn.one_hot(t_safe, C, axis=1, dtype=jnp.float32) * validf[:, None]
    p_m = p * validf[:, None]
    inter = jnp.sum(p_m * onehot, axis=(0, 2, 3))
    union = jnp.sum(p_m + onehot, axis=(0, 2, 3))
    dice = (2.0 * inter + smooth) / (union + smooth)
    dice_loss = 1.0 - jnp.mean(dice)
    return weight_ce * ce + weight_dice * dice_loss


if __name__ == "__main__":
    key = jax.random.PRNGKey(0)
    k1, k2, k3, k4, k5, k6 = jax.random.split(key, 6)

    # Case 1: default path (single full-extent pixel tile).
    N, C, H, W = 2, 8, 16, 16
    logits = jax.random.normal(k1, (N, C, H, W), dtype=jnp.float32)
    targets = jax.random.randint(k2, (N, H, W), 0, C, dtype=jnp.int32)
    ignore_mask = jax.random.bernoulli(k3, 0.1, (N, H, W))
    targets = jnp.where(ignore_mask, jnp.int32(255), targets)

    loss = jax.block_until_ready(combined_loss(logits, targets))
    ref = _reference_combined_loss(logits, targets)
    assert jnp.allclose(loss, ref, atol=1e-5, rtol=1e-5), (loss, ref)

    # Case 2: multi-tile + dual-core pixel split path (tile=128 -> splits=2).
    loss2 = jax.block_until_ready(combined_loss(logits, targets, tile_pixels=128))
    assert jnp.allclose(loss2, ref, atol=1e-5, rtol=1e-5), (loss2, ref)

    # Case 3: ragged fallback path (H*W=300, tile=128 -> last tile masked).
    N3, C3, H3, W3 = 1, 6, 10, 30
    logits3 = jax.random.normal(k4, (N3, C3, H3, W3), dtype=jnp.float32)
    targets3 = jax.random.randint(k5, (N3, H3, W3), 0, C3, dtype=jnp.int32)
    ignore3 = jax.random.bernoulli(k6, 0.1, (N3, H3, W3))
    targets3 = jnp.where(ignore3, jnp.int32(255), targets3)

    loss3 = jax.block_until_ready(combined_loss(logits3, targets3, tile_pixels=128))
    ref3 = _reference_combined_loss(logits3, targets3)
    assert jnp.allclose(loss3, ref3, atol=1e-5, rtol=1e-5), (loss3, ref3)

    print("KERNEL_OK")
</pallas_src>

<mosaic_0001>
module attributes {stable_mosaic.version = 11 : i64} {
  func.func @_combined_loss_kernel(%arg0: i32, %arg1: i32, %arg2: i32, %arg3: memref<1x8x256xf32, #tpu.memory_space<vmem>>, %arg4: memref<1x1x256xi32, #tpu.memory_space<vmem>>, %arg5: memref<1x1x1x1xf32, #tpu.memory_space<vmem>>, %arg6: memref<1x1x1x1xf32, #tpu.memory_space<vmem>>, %arg7: memref<1x1x8x1xf32, #tpu.memory_space<vmem>>, %arg8: memref<1x1x8x1xf32, #tpu.memory_space<vmem>>) attributes {dimension_semantics = [#tpu.dimension_semantics<parallel>, #tpu.dimension_semantics<parallel>, #tpu.dimension_semantics<arbitrary>], iteration_bounds = array<i64: 2, 1, 1>, scalar_prefetch = 0 : i64, scratch_operands = 0 : i64, tpu.core_type = #tpu.core_type<tc>, window_params = [{transform_indices = @transform_0, window_bounds = array<i64: 1, 8, 256>}, {transform_indices = @transform_1, window_bounds = array<i64: 1, 1, 256>}, {transform_indices = @transform_2, window_bounds = array<i64: 1, 1, 1, 1>}, {transform_indices = @transform_3, window_bounds = array<i64: 1, 1, 1, 1>}, {transform_indices = @transform_4, window_bounds = array<i64: 1, 1, 8, 1>}, {transform_indices = @transform_5, window_bounds = array<i64: 1, 1, 8, 1>}]} {
    %c0_i32 = arith.constant 0 : i32
    %0 = arith.cmpi eq, %arg2, %c0_i32 : i32
    %1 = arith.extui %0 : i1 to i32
    %c0_i32_0 = arith.constant 0 : i32
    %2 = arith.cmpi ne, %1, %c0_i32_0 : i32
    scf.if %2 {
      %cst_47 = arith.constant 0.000000e+00 : f32
      %76 = vector.broadcast %cst_47 : f32 to vector<1x1xf32>
      %c0_48 = arith.constant 0 : index
      %c0_49 = arith.constant 0 : index
      %c0_50 = arith.constant 0 : index
      %c0_51 = arith.constant 0 : index
      %77 = vector.load %arg5[%c0_48, %c0_49, %c0_50, %c0_51] : memref<1x1x1x1xf32, #tpu.memory_space<vmem>>, vector<1x1x1x1xf32>
      %78 = vector.shape_cast %77 : vector<1x1x1x1xf32> to vector<1x1xf32>
      %79 = vector.shape_cast %76 : vector<1x1xf32> to vector<1x1x1x1xf32>
      tpu.vector_store %arg5[%c0_48, %c0_49, %c0_50, %c0_51], %79 {strides = array<i32>} : memref<1x1x1x1xf32, #tpu.memory_space<vmem>>, vector<1x1x1x1xf32>,
      %cst_52 = arith.constant 0.000000e+00 : f32
      %80 = vector.broadcast %cst_52 : f32 to vector<1x1xf32>
      %c0_53 = arith.constant 0 : index
      %c0_54 = arith.constant 0 : index
      %c0_55 = arith.constant 0 : index
      %c0_56 = arith.constant 0 : index
      %81 = vector.load %arg6[%c0_53, %c0_54, %c0_55, %c0_56] : memref<1x1x1x1xf32, #tpu.memory_space<vmem>>, vector<1x1x1x1xf32>
      %82 = vector.shape_cast %81 : vector<1x1x1x1xf32> to vector<1x1xf32>
      %83 = vector.shape_cast %80 : vector<1x1xf32> to vector<1x1x1x1xf32>
      tpu.vector_store %arg6[%c0_53, %c0_54, %c0_55, %c0_56], %83 {strides = array<i32>} : memref<1x1x1x1xf32, #tpu.memory_space<vmem>>, vector<1x1x1x1xf32>,
      %cst_57 = arith.constant 0.000000e+00 : f32
      %84 = vector.broadcast %cst_57 : f32 to vector<8x1xf32>
      %c0_58 = arith.constant 0 : index
      %c0_59 = arith.constant 0 : index
      %c0_60 = arith.constant 0 : index
      %c0_61 = arith.constant 0 : index
      %85 = vector.load %arg7[%c0_58, %c0_59, %c0_60, %c0_61] : memref<1x1x8x1xf32, #tpu.memory_space<vmem>>, vector<1x1x8x1xf32>
      %86 = vector.shape_cast %85 : vector<1x1x8x1xf32> to vector<8x1xf32>
      %87 = vector.shape_cast %84 : vector<8x1xf32> to vector<1x1x8x1xf32>
      tpu.vector_store %arg7[%c0_58, %c0_59, %c0_60, %c0_61], %87 {strides = array<i32>} : memref<1x1x8x1xf32, #tpu.memory_space<vmem>>, vector<1x1x8x1xf32>,
      %cst_62 = arith.constant 0.000000e+00 : f32
      %88 = vector.broadcast %cst_62 : f32 to vector<8x1xf32>
      %c0_63 = arith.constant 0 : index
      %c0_64 = arith.constant 0 : index
      %c0_65 = arith.constant 0 : index
      %c0_66 = arith.constant 0 : index
      %89 = vector.load %arg8[%c0_63, %c0_64, %c0_65, %c0_66] : memref<1x1x8x1xf32, #tpu.memory_space<vmem>>, vector<1x1x8x1xf32>
      %90 = vector.shape_cast %89 : vector<1x1x8x1xf32> to vector<8x1xf32>
      %91 = vector.shape_cast %88 : vector<8x1xf32> to vector<1x1x8x1xf32>
      tpu.vector_store %arg8[%c0_63, %c0_64, %c0_65, %c0_66], %91 {strides = array<i32>} : memref<1x1x8x1xf32, #tpu.memory_space<vmem>>, vector<1x1x8x1xf32>,
    } else {
    }
    %c0 = arith.constant 0 : index
    %c0_1 = arith.constant 0 : index
    %c0_2 = arith.constant 0 : index
    %3 = vector.load %arg3[%c0, %c0_1, %c0_2] : memref<1x8x256xf32, #tpu.memory_space<vmem>>, vector<1x8x256xf32>
    %4 = vector.shape_cast %3 : vector<1x8x256xf32> to vector<8x256xf32>
    %c0_3 = arith.constant 0 : index
    %c0_4 = arith.constant 0 : index
    %c0_5 = arith.constant 0 : index
    %5 = vector.load %arg4[%c0_3, %c0_4, %c0_5] : memref<1x1x256xi32, #tpu.memory_space<vmem>>, vector<1x1x256xi32>
    %6 = vector.shape_cast %5 : vector<1x1x256xi32> to vector<1x256xi32>
    %c255_i32 = arith.constant 255 : i32
    %7 = vector.broadcast %c255_i32 : i32 to vector<1x256xi32>
    %8 = arith.cmpi ne, %6, %7 : vector<1x256xi32>
    %9 = arith.extui %8 : vector<1x256xi1> to vector<1x256xi32>
    %10 = arith.sitofp %9 : vector<1x256xi32> to vector<1x256xf32>
    %cst = arith.constant dense<0xFF800000> : vector<256xf32>
    %11 = vector.multi_reduction <maximumf>, %4, %cst [0] : vector<8x256xf32> to vector<256xf32>
    %12 = vector.shape_cast %11 : vector<256xf32> to vector<1x256xf32>
    %13 = vector.broadcast %12 : vector<1x256xf32> to vector<8x256xf32>
    %14 = arith.subf %4, %13 : vector<8x256xf32>
    %15 = math.exp %14 : vector<8x256xf32>
    %cst_6 = arith.constant dense<0.000000e+00> : vector<256xf32>
    %16 = vector.multi_reduction <add>, %15, %cst_6 [0] : vector<8x256xf32> to vector<256xf32>
    %17 = vector.shape_cast %16 : vector<256xf32> to vector<1x256xf32>
    %18 = tpu.reciprocal %17 : vector<1x256xf32> -> vector<1x256xf32>
    %19 = arith.mulf %10, %18 : vector<1x256xf32>
    %20 = vector.broadcast %19 : vector<1x256xf32> to vector<8x256xf32>
    %21 = arith.mulf %15, %20 : vector<8x256xf32>
    %22 = tpu.iota {dimensions = array<i32: 0>} : vector<8x256xi32>
    %23 = vector.broadcast %6 : vector<1x256xi32> to vector<8x256xi32>
    %24 = arith.cmpi eq, %22, %23 : vector<8x256xi32>
    %cst_7 = arith.constant 0.000000e+00 : f32
    %25 = vector.broadcast %cst_7 : f32 to vector<8x256xf32>
    %26 = arith.select %24, %4, %25 : vector<8x256xi1>, vector<8x256xf32>
    %cst_8 = arith.constant dense<0.000000e+00> : vector<256xf32>
    %27 = vector.multi_reduction <add>, %26, %cst_8 [0] : vector<8x256xf32> to vector<256xf32>
    %28 = vector.shape_cast %27 : vector<256xf32> to vector<1x256xf32>
    %29 = math.log %17 : vector<1x256xf32>
    %30 = arith.addf %12, %29 : vector<1x256xf32>
    %31 = arith.subf %30, %28 : vector<1x256xf32>
    %32 = arith.mulf %10, %31 : vector<1x256xf32>
    %c0_9 = arith.constant 0 : index
    %c0_10 = arith.constant 0 : index
    %c0_11 = arith.constant 0 : index
    %c0_12 = arith.constant 0 : index
    %33 = vector.load %arg5[%c0_9, %c0_10, %c0_11, %c0_12] : memref<1x1x1x1xf32, #tpu.memory_space<vmem>>, vector<1x1x1x1xf32>
    %34 = vector.shape_cast %33 : vector<1x1x1x1xf32> to vector<1x1xf32>
    %35 = vector.shape_cast %32 : vector<1x256xf32> to vector<1x1x256xf32>
    %cst_13 = arith.constant dense<0.000000e+00> : vector<1xf32>
    %36 = vector.multi_reduction <add>, %35, %cst_13 [1, 2] : vector<1x1x256xf32> to vector<1xf32>
    %37 = vector.shape_cast %36 : vector<1xf32> to vector<1x1x1xf32>
    %38 = vector.extract %37[0, 0, 0] : f32 from vector<1x1x1xf32>
    %39 = vector.broadcast %38 : f32 to vector<1x1xf32>
    %40 = arith.addf %34, %39 : vector<1x1xf32>
    %c0_14 = arith.constant 0 : index
    %c0_15 = arith.constant 0 : index
    %c0_16 = arith.constant 0 : index
    %c0_17 = arith.constant 0 : index
    %41 = vector.load %arg5[%c0_14, %c0_15, %c0_16, %c0_17] : memref<1x1x1x1xf32, #tpu.memory_space<vmem>>, vector<1x1x1x1xf32>
    %42 = vector.shape_cast %41 : vector<1x1x1x1xf32> to vector<1x1xf32>
    %43 = vector.shape_cast %40 : vector<1x1xf32> to vector<1x1x1x1xf32>
    tpu.vector_store %arg5[%c0_14, %c0_15, %c0_16, %c0_17], %43 {strides = array<i32>} : memref<1x1x1x1xf32, #tpu.memory_space<vmem>>, vector<1x1x1x1xf32>,
    %c0_18 = arith.constant 0 : index
    %c0_19 = arith.constant 0 : index
    %c0_20 = arith.constant 0 : index
    %c0_21 = arith.constant 0 : index
    %44 = vector.load %arg6[%c0_18, %c0_19, %c0_20, %c0_21] : memref<1x1x1x1xf32, #tpu.memory_space<vmem>>, vector<1x1x1x1xf32>
    %45 = vector.shape_cast %44 : vector<1x1x1x1xf32> to vector<1x1xf32>
    %46 = vector.shape_cast %10 : vector<1x256xf32> to vector<1x1x256xf32>
    %cst_22 = arith.constant dense<0.000000e+00> : vector<1xf32>
    %47 = vector.multi_reduction <add>, %46, %cst_22 [1, 2] : vector<1x1x256xf32> to vector<1xf32>
    %48 = vector.shape_cast %47 : vector<1xf32> to vector<1x1x1xf32>
    %49 = vector.extract %48[0, 0, 0] : f32 from vector<1x1x1xf32>
    %50 = vector.broadcast %49 : f32 to vector<1x1xf32>
    %51 = arith.addf %45, %50 : vector<1x1xf32>
    %c0_23 = arith.constant 0 : index
    %c0_24 = arith.constant 0 : index
    %c0_25 = arith.constant 0 : index
    %c0_26 = arith.constant 0 : index
    %52 = vector.load %arg6[%c0_23, %c0_24, %c0_25, %c0_26] : memref<1x1x1x1xf32, #tpu.memory_space<vmem>>, vector<1x1x1x1xf32>
    %53 = vector.shape_cast %52 : vector<1x1x1x1xf32> to vector<1x1xf32>
    %54 = vector.shape_cast %51 : vector<1x1xf32> to vector<1x1x1x1xf32>
    tpu.vector_store %arg6[%c0_23, %c0_24, %c0_25, %c0_26], %54 {strides = array<i32>} : memref<1x1x1x1xf32, #tpu.memory_space<vmem>>, vector<1x1x1x1xf32>,
    %c0_27 = arith.constant 0 : index
    %c0_28 = arith.constant 0 : index
    %c0_29 = arith.constant 0 : index
    %c0_30 = arith.constant 0 : index
    %55 = vector.load %arg7[%c0_27, %c0_28, %c0_29, %c0_30] : memref<1x1x8x1xf32, #tpu.memory_space<vmem>>, vector<1x1x8x1xf32>
    %56 = vector.shape_cast %55 : vector<1x1x8x1xf32> to vector<8x1xf32>
    %cst_31 = arith.constant 0.000000e+00 : f32
    %57 = vector.broadcast %cst_31 : f32 to vector<8x256xf32>
    %58 = arith.select %24, %21, %57 : vector<8x256xi1>, vector<8x256xf32>
    %cst_32 = arith.constant dense<0.000000e+00> : vector<8xf32>
    %59 = vector.multi_reduction <add>, %58, %cst_32 [1] : vector<8x256xf32> to vector<8xf32>
    %60 = vector.shape_cast %59 : vector<8xf32> to vector<8x1xf32>
    %61 = arith.addf %56, %60 : vector<8x1xf32>
    %c0_33 = arith.constant 0 : index
    %c0_34 = arith.constant 0 : index
    %c0_35 = arith.constant 0 : index
    %c0_36 = arith.constant 0 : index
    %62 = vector.load %arg7[%c0_33, %c0_34, %c0_35, %c0_36] : memref<1x1x8x1xf32, #tpu.memory_space<vmem>>, vector<1x1x8x1xf32>
    %63 = vector.shape_cast %62 : vector<1x1x8x1xf32> to vector<8x1xf32>
    %64 = vector.shape_cast %61 : vector<8x1xf32> to vector<1x1x8x1xf32>
    tpu.vector_store %arg7[%c0_33, %c0_34, %c0_35, %c0_36], %64 {strides = array<i32>} : memref<1x1x8x1xf32, #tpu.memory_space<vmem>>, vector<1x1x8x1xf32>,
    %c0_37 = arith.constant 0 : index
    %c0_38 = arith.constant 0 : index
    %c0_39 = arith.constant 0 : index
    %c0_40 = arith.constant 0 : index
    %65 = vector.load %arg8[%c0_37, %c0_38, %c0_39, %c0_40] : memref<1x1x8x1xf32, #tpu.memory_space<vmem>>, vector<1x1x8x1xf32>
    %66 = vector.shape_cast %65 : vector<1x1x8x1xf32> to vector<8x1xf32>
    %cst_41 = arith.constant 1.000000e+00 : f32
    %67 = vector.broadcast %cst_41 : f32 to vector<8x256xf32>
    %68 = arith.addf %21, %67 : vector<8x256xf32>
    %69 = arith.select %24, %68, %21 : vector<8x256xi1>, vector<8x256xf32>
    %cst_42 = arith.constant dense<0.000000e+00> : vector<8xf32>
    %70 = vector.multi_reduction <add>, %69, %cst_42 [1] : vector<8x256xf32> to vector<8xf32>
    %71 = vector.shape_cast %70 : vector<8xf32> to vector<8x1xf32>
    %72 = arith.addf %66, %71 : vector<8x1xf32>
    %c0_43 = arith.constant 0 : index
    %c0_44 = arith.constant 0 : index
    %c0_45 = arith.constant 0 : index
    %c0_46 = arith.constant 0 : index
    %73 = vector.load %arg8[%c0_43, %c0_44, %c0_45, %c0_46] : memref<1x1x8x1xf32, #tpu.memory_space<vmem>>, vector<1x1x8x1xf32>
    %74 = vector.shape_cast %73 : vector<1x1x8x1xf32> to vector<8x1xf32>
    %75 = vector.shape_cast %72 : vector<8x1xf32> to vector<1x1x8x1xf32>
    tpu.vector_store %arg8[%c0_43, %c0_44, %c0_45, %c0_46], %75 {strides = array<i32>} : memref<1x1x8x1xf32, #tpu.memory_space<vmem>>, vector<1x1x8x1xf32>,
    return
  }
  func.func @transform_0(%arg0: i32, %arg1: i32, %arg2: i32) -> (i32, i32, i32) {
    %c1_i32 = arith.constant 1 : i32
    %0 = arith.muli %arg1, %c1_i32 : i32
    %1 = arith.addi %0, %arg2 : i32
    %c0_i32 = arith.constant 0 : i32
    %c0_i32_0 = arith.constant 0 : i32
    return %arg0, %c0_i32, %1 : i32, i32, i32
  }
  func.func @transform_1(%arg0: i32, %arg1: i32, %arg2: i32) -> (i32, i32, i32) {
    %c1_i32 = arith.constant 1 : i32
    %0 = arith.muli %arg1, %c1_i32 : i32
    %1 = arith.addi %0, %arg2 : i32
    %c0_i32 = arith.constant 0 : i32
    %c0_i32_0 = arith.constant 0 : i32
    return %arg0, %c0_i32, %1 : i32, i32, i32
  }
  func.func @transform_2(%arg0: i32, %arg1: i32, %arg2: i32) -> (i32, i32, i32, i32) {
    %c0_i32 = arith.constant 0 : i32
    %c0_i32_0 = arith.constant 0 : i32
    %c0_i32_1 = arith.constant 0 : i32
    return %arg0, %arg1, %c0_i32, %c0_i32_0 : i32, i32, i32, i32
  }
  func.func @transform_3(%arg0: i32, %arg1: i32, %arg2: i32) -> (i32, i32, i32, i32) {
    %c0_i32 = arith.constant 0 : i32
    %c0_i32_0 = arith.constant 0 : i32
    %c0_i32_1 = arith.constant 0 : i32
    return %arg0, %arg1, %c0_i32, %c0_i32_0 : i32, i32, i32, i32
  }
  func.func @transform_4(%arg0: i32, %arg1: i32, %arg2: i32) -> (i32, i32, i32, i32) {
    %c0_i32 = arith.constant 0 : i32
    %c0_i32_0 = arith.constant 0 : i32
    %c0_i32_1 = arith.constant 0 : i32
    return %arg0, %arg1, %c0_i32, %c0_i32_0 : i32, i32, i32, i32
  }
  func.func @transform_5(%arg0: i32, %arg1: i32, %arg2: i32) -> (i32, i32, i32, i32) {
    %c0_i32 = arith.constant 0 : i32
    %c0_i32_0 = arith.constant 0 : i32
    %c0_i32_1 = arith.constant 0 : i32
    return %arg0, %arg1, %c0_i32, %c0_i32_0 : i32, i32, i32, i32
  }
}

</mosaic_0001>

<bundles_post_ra>
// kernel: tpu_custom_call.1
= control target key start
LH: loop header
LB: loop body
LE: loop exit
PB: predicated region body
PF: predicated region fallthrough
CT: control target
= control target key end

     0   :  { %11 = vsyncpa [#allocation3], 0  ;;  %s1214_s0 = inlined_call_operand.hbm [shape: f32[2,8,256], index: 0, kind: input, shape index: {}]   ;;  %s1215_s1 = inlined_call_operand.hbm [shape: s32[2,1,256], index: 1, kind: input, shape index: {}]   ;;  %s1216_s2 = inlined_call_operand.vmem [shape: f32[2,1,1,1], index: 2, kind: output, shape index: {0}]   ;;  %s1217_s3 = inlined_call_operand.vmem [shape: f32[2,1,1,1], index: 3, kind: output, shape index: {1}]   ;;  %s1218_s4 = inlined_call_operand.vmem [shape: f32[2,1,8,1], index: 4, kind: output, shape index: {2}]   ;;  %s1219_s5 = inlined_call_operand.vmem [shape: f32[2,1,8,1], index: 5, kind: output, shape index: {3}]  }
   0x1   :  { %13 = vsyncpa [#allocation3 + $0x1], 0 }
   0x2   :  { %14 = vsyncpa [#allocation5], 0 }
   0x3   :  { %16 = vsyncpa [#allocation5 + $0x1], 0  ;;  %s1031_s18 = smov 0   ;;  %s1033_s19 = smov 0  }
   0x4   :  { %s1035_s20 = smov 0   ;;  %s1037_s21 = smov 0  }
   0x5   :  { %s1039_s22 = smov 0   ;;  %s1041_s23 = smov 0  }
   0x6 LB: > { %s789_s24 = sadd.s32 4294967295, %s998_s23   ;;  %s41_s25 = sadd.s32 1, %s994_s22  ;;  %s998_s23 = sphi %s1041_s23, %s22_s23   ;;  %s994_s22 = sphi %s1039_s22, %s1233_s22   ;;  %s990_s21 = sphi %s1037_s21, %s1232_s21   ;;  %s986_s20 = sphi %s1035_s20, %s1231_s20   ;;  %s982_s19 = sphi %s1033_s19, %s1230_s19   ;;  %s978_s18 = sphi %s1031_s18, %s1229_s18  }
   0x7   : > { %p43_p0 = scmp.ge.s32.totalorder %s41_s25, 2  ;;  %s52_s26 = sadd.s32 1, %s986_s20 }
   0x8   : > { %p59_p1 = scmp.ne.s32.totalorder %s986_s20, %s982_s19  ;;  %p60_p2 = scmp.eq.s32.totalorder %s998_s23, 0 }
   0x9   : > { %s1235_s25 = smov (%p43_p0, %s41_s25), 0  ;;  %p65_p4 = scmp.ne.s32.totalorder %s982_s19, %s978_s18 }
   0xa   : > { %p1067_p3 = por %p60_p2, %p59_p1  ;;  %s47_s28 = ssub.s32 %s994_s22, %s1235_s25 }
   0xb   : > { %p66_p5 = scmp.eq.s32.totalorder %s789_s24, 0  ;;  %p50_p6 = scmp.eq.s32.totalorder %s47_s28, 0 }
   0xc   : > { %p822_p8 = scmp.lt.s32.totalorder %s998_s23, 2  ;;  %s231_s6 = sand.u32 1, %s986_s20  }
   0xd   : > { %p1074_p7 = por %p66_p5, %p65_p4  ;;  %s806_s7 = sshll.u32 %s994_s22, 4 }
   0xe   : > { %s1080_s30 = scalar_select %p50_p6, %s986_s20, %s52_s26  }
   0xf   : > { %s793_s8 = sshll.u32 %s231_s6, 4  ;;  %s243_s11 = scalar_lea.hbm %s1214_s0, %s806_s7 }
  0x10   : > { %s245_s12 = sshll.u32 %s243_s11, 4  ;;  %s235_s13 = scalar_lea.vmem [#allocation2], %s793_s8  ;;  %s246_s12 = int_to_ptr.hbm [resolvable:$true] %s245_s12 }
  0x11   : > { %s247_s14 = sshll.u32 %s235_s13, 4  ;;  %p1089_p9 = pnand %p822_p8, %p1067_p3  ;;  %s248_s14 = int_to_ptr.vmem [resolvable:$true] %s247_s14 }
  0x12   : > { %p798_p10 = scmp.ge.s32.totalorder %s998_s23, 1  ;;  %p274_p11 = scmp.lt.s32.totalorder %s998_s23, 3 }
  0x13   : > { %s796_s16 = sshll.u32 %s231_s6, 1  ;;  %s232_s17 = scalar_lea.sflag [#allocation3], %s231_s6 }
  0x14   : > { %818 = dma.hbm_to_vmem [thread:$0]  (!%p1089_p9), %s246_s12, 256, %s248_s14, %s232_s17  }
  0x15   : > { %p275_p12 = pnand %p798_p10, %p274_p11  ;;  %s797_s18 = sshll.u32 %s994_s22, 1 }
  0x16   : > { %s258_s24 = scalar_lea.vmem [#allocation4], %s796_s16  ;;  %s265_s27 = scalar_lea.hbm %s1215_s1, %s797_s18 }
  0x17   : > { %s269_s26 = sshll.u32 %s258_s24, 4  ;;  %s267_s8 = sshll.u32 %s265_s27, 4  ;;  %s270_s26 = int_to_ptr.vmem [resolvable:$true] %s269_s26  ;;  %s268_s8 = int_to_ptr.hbm [resolvable:$true] %s267_s8 }
  0x18   : > { %s255_s9 = scalar_lea.sflag [#allocation5], %s231_s6  ;;  %278 = sbr.rel (%p275_p12) target bundleno = 284 (0x11c), region = 28 }
  0x19   : > { %821 = dma.hbm_to_vmem [thread:$0]  (!%p1089_p9), %s268_s8, 32, %s270_s26, %s255_s9  }
  0x1a   : > { %s280_s10 = sand.u32 (!%p275_p12), 1, %s982_s19  }
  0x1b   : > { %s799_s11 = sshll.u32 (!%p275_p12), %s280_s10, 4  ;;  %s281_s12 = scalar_lea.sflag (!%p275_p12), [#allocation3], %s280_s10 }
  0x1c   : > { %s284_s13 = scalar_lea.vmem (!%p275_p12), [#allocation2], %s799_s11 }
  0x1d   : > { %969 = dma.done.wait (%p1074_p7), %s281_s12, 256  }
  0x1e   : > { %971 = vsyncadd (%p1074_p7), %s281_s12, 4294967040  ;;  %s800_s14 = sshll.u32 %s280_s10, 1  ;;  %s291_s16 = scalar_lea.sflag [#allocation5], %s280_s10 }
  0x1f   : > { %s294_s17 = scalar_lea.vmem [#allocation4], %s800_s14 }
  0x20   : > { %973 = dma.done.wait (%p1074_p7), %s291_s16, 32  }
  0x21   : > { %975 = vsyncadd (%p1074_p7), %s291_s16, 4294967264  ;;  %v388_v0 = vld [vmem:[%s284_s13] sm:$0xff]  ;;  %v389_v1 = vld [vmem:[%s284_s13 + $0x8] sm:$0xff]  ;;  %v466_v12 = vlaneseq  ;;  %vm455_vm8 = vcmask 1040384   ;;  %p352_p13 = scmp.lt.s32.totalorder %s990_s21, 1  ;;  %vm382_vm12 = vcmask 0  }
  0x22   : > { %v394_v2 = vrot.slane %v388_v0, 4  ;;  %v400_v3 = vrot.slane %v389_v1, 4  ;;  %v1112_v13 = vld [vmem:[%s294_s17] sm:$0x3]  ;;  %vm385_vm13 = vcmask 7168  }
  0x23   : > { %v467_v18 = vshrl.u32 %v466_v12, 7  ;;  %v468_v19 = vperm.slane %v1112_v13, 0  ;;  %v469_v20 = vperm.slane %v1112_v13, 1  ;;  %vm391_vm4 = vcmp.ne.s32.totalorder %v1112_v13, 255  ;;  %s1237_s21 = smov (!%p352_p13, %s990_s21), 1 }
  0x24   : > { %v395_v4 = vmax.f32 %v388_v0, %v394_v2  ;;  %v401_v5 = vmax.f32 %v389_v1, %v400_v3  ;;  %v1000_v12 = vmov 0.0   ;;  %s1169_s15 = scalar_lea.vmem %s1216_s2, %s1237_s21  ;;  %s1174_s26 = scalar_lea.vmem %s1217_s3, %s1237_s21 }
  0x25   : > { %vm1116_vm0 = vcmp.eq.s32.totalorder %v467_v18, %v468_v19  ;;  %vm1120_vm1 = vcmp.eq.s32.totalorder %v467_v18, %v469_v20  ;;  %383 = vst.msk [vmem:[%s1169_s15] sm:$0x1] %vm382_vm12, %v1000_v12  ;;  %s801_s28 = sshll.u32 %s1237_s21, 3 }
  0x26   : > { %v396_v6 = vrot.slane %v395_v4, 2  ;;  %v402_v7 = vrot.slane %v401_v5, 2  ;;  %v472_v25 = vsel %vm1116_vm0, %v388_v0, 0.0  ;;  %v473_v26 = vsel %vm1120_vm1, %v389_v1, 0.0  ;;  %384 = vst.msk [vmem:[%s1174_s26] sm:$0x1] %vm382_vm12, %v1000_v12  ;;  %s370_s8 = scalar_lea.vmem %s1218_s4, %s801_s28  ;;  %s377_s11 = scalar_lea.vmem %s1219_s5, %s801_s28 }
  0x27   : > { %v474_v30 = vrot.slane %v472_v25, 4  ;;  %v480_v31 = vrot.slane %v473_v26, 4  ;;  %386 = vst.msk [vmem:[%s370_s8] sm:$0xff] %vm385_vm13, %v1000_v12 }
  0x28   : > { %v397_v8 = vmax.f32 %v395_v4, %v396_v6  ;;  %v403_v9 = vmax.f32 %v401_v5, %v402_v7  ;;  %387 = vst.msk [vmem:[%s377_s11] sm:$0xff] %vm385_vm13, %v1000_v12 }
  0x29   : > { %v475_v36 = vadd.f32 %v474_v30, %v472_v25  ;;  %v481_v37 = vadd.f32 %v480_v31, %v473_v26 }
  0x2a   : > { %v398_v10 = vrot.slane %v397_v8, 1  ;;  %v404_v11 = vrot.slane %v403_v9, 1 }
  0x2b   : > { %v476_v42 = vrot.slane %v475_v36, 2  ;;  %v482_v43 = vrot.slane %v481_v37, 2 }
  0x2c   : > { %v399_v14 = vmax.f32 %v397_v8, %v398_v10  ;;  %v405_v15 = vmax.f32 %v403_v9, %v404_v11 }
  0x2d   : > { %v477_v47 = vadd.f32 %v476_v42, %v475_v36  ;;  %v483_v48 = vadd.f32 %v482_v43, %v481_v37 }
  0x2e   : > { %v406_v16 = vsub.f32 %v388_v0, %v399_v14  ;;  %v407_v17 = vsub.f32 %v389_v1, %v405_v15 }
  0x2f   : > { %v478_v49 = vrot.slane %v477_v47, 1  ;;  %v484_v50 = vrot.slane %v483_v48, 1 }
  0x30   : > { %v408_v21 = vmul.f32 1.442695, %v406_v16  ;;  %v410_v22 = vmul.f32 1.442695, %v407_v17 }
  0x31   : > { %v479_v55 = vadd.f32 %v478_v49, %v477_v47  ;;  %v485_v56 = vadd.f32 %v484_v50, %v483_v48 }
  0x32   : > { %872 = vpow2.f32 %v408_v21 }
  0x33   : > { %874 = vpow2.f32 %v410_v22 }
  0x38   : > { %v1128_v27 = vpop.eup %872 }
  0x39   : > { %v1130_v28 = vpop.eup %874  ;;  %v412_v29 = vrot.slane %v1128_v27, 4 }
  0x3a   : > { %v418_v32 = vrot.slane %v1130_v28, 4 }
  0x3b   : > { %v413_v33 = vadd.f32 %v1128_v27, %v412_v29 }
  0x3c   : > { %v419_v34 = vadd.f32 %v1130_v28, %v418_v32 }
  0x3d   : > { %v414_v35 = vrot.slane %v413_v33, 2 }
  0x3e   : > { %v420_v38 = vrot.slane %v419_v34, 2 }
  0x3f   : > { %v415_v39 = vadd.f32 %v414_v35, %v413_v33 }
  0x40   : > { %v421_v40 = vadd.f32 %v420_v38, %v419_v34 }
  0x41   : > { %v416_v41 = vrot.slane %v415_v39, 1 }
  0x42   : > { %v422_v44 = vrot.slane %v421_v40, 1 }
  0x43   : > { %v417_v45 = vadd.f32 %v416_v41, %v415_v39 }
  0x44   : > { %v423_v46 = vadd.f32 %v422_v44, %v421_v40 }
  0x45   : > { %876 = vlog2.f32 %v417_v45  ;;  %vm429_vm5 = vweird.f32 %v417_v45  ;;  %v435_v2 = vand.u32 2147483648, %v417_v45  ;;  %v433_v4 = vand.u32 2147483647, %v417_v45 }
  0x46   : > { %878 = vrcp.f32 %v423_v46  ;;  %vm443_vm2 = vweird.f32 %v423_v46  ;;  %v449_v61 = vand.u32 2147483648, %v423_v46  ;;  %v447_v0 = vand.u32 2147483647, %v423_v46 }
  0x47   : > { %880 = vlog2.f32 %v423_v46  ;;  %v436_v16 = vor.u32 1.1754944e-38, %v435_v2  ;;  %vm434_vm11 = vcmp.eq.f32.partialorder %v433_v4, 8.507059e+37  ;;  %v552_v2 = vld [vmem:[%s377_s11] sm:$0xff] }
  0x48   : > { %882 = vrcp.f32 %v417_v45  ;;  %v450_v9 = vor.u32 1.1754944e-38, %v449_v61  ;;  %vm448_vm9 = vcmp.eq.f32.partialorder %v447_v0, 8.507059e+37  ;;  %v500_v4 = vld [vmem:[%s1169_s15] sm:$0x1] }
  0x4b   : > { %v877_v51 = vpop.eup %876 }
  0x4c   : > { %v879_v52 = vpop.eup %878  ;;  %v487_v53 = vmul.f32 0.6931472, %v877_v51 }
  0x4d   : > { %v881_v54 = vpop.eup %880  ;;  %v439_v57 = vmul.f32 %v879_v52, %v423_v46  ;;  %vm444_vm3 = vweird.f32 %v879_v52 }
  0x4e   : > { %v883_v58 = vpop.eup %882  ;;  %v489_v59 = vmul.f32 0.6931472, %v881_v54  ;;  %v490_v60 = vadd.f32 %v487_v53, %v399_v14  ;;  %vm1138_vm7 = vmor %vm443_vm2, %vm444_vm3  ;;  %v803_v14 = vsel %vm391_vm4, 1.0, %v1000_v12 }
  0x4f   : > { %v425_v62 = vmul.f32 %v883_v58, %v417_v45  ;;  %v440_v63 = vsub.f32 1.0, %v439_v57  ;;  %vm430_vm6 = vweird.f32 %v883_v58  ;;  %v524_v34 = vperm.slane %v803_v14, 0 }
  0x50   : > { %v491_v1 = vadd.f32 %v489_v59, %v405_v15  ;;  %v492_v6 = vsub.f32 %v490_v60, %v479_v55  ;;  %vm431_vm10 = vmor %vm429_vm5, %vm430_vm6  ;;  %v525_v35 = vperm.slane %v803_v14, 1 }
  0x51   : > { %v426_v3 = vsub.f32 1.0, %v425_v62  ;;  %v441_v5 = vmul.f32 %v879_v52, %v440_v63  ;;  %v528_v41 = vsel %vm455_vm8, %v524_v34, 0.0  ;;  %v543_v63 = vld [vmem:[%s370_s8] sm:$0xff] }
  0x52   : > { %v493_v7 = vsub.f32 %v491_v1, %v485_v56  ;;  %v529_v42 = vsel %vm455_vm8, %v525_v35, 0.0 }
  0x53   : > { %v427_v10 = vmul.f32 %v883_v58, %v426_v3  ;;  %v442_v11 = vadd.f32 %v879_v52, %v441_v5  ;;  %v530_v48 = vadd.f32 %v529_v42, %v528_v41 }
  0x54   : > { %v496_v15 = vrot.slane %v493_v7, 7  ;;  %v522_v7 = vld [vmem:[%s1174_s26] sm:$0x1] }
  0x55   : > { %v428_v17 = vadd.f32 %v883_v58, %v427_v10  ;;  %v446_v18 = vsel %vm1138_vm7, %v879_v52, %v442_v11 }
  0x56   : > { %v497_v19 = vsel %vm455_vm8, %v492_v6, %v496_v15  ;;  %v451_v20 = vsel %vm448_vm9, %v450_v9, %v446_v18 }
  0x57   : > { %v499_v21 = vmul.f32 %v803_v14, %v497_v19  ;;  %v432_v22 = vsel %vm431_vm10, %v883_v58, %v428_v17  ;;  %v454_v25 = vrot.slane %v451_v20, 7 }
  0x58   : > { %v437_v26 = vsel %vm434_vm11, %v436_v16, %v432_v22 }
  0x59   : > { %v502_v29 = vperm.slane %v499_v21, 0  ;;  %v503_v30 = vperm.slane %v499_v21, 1  ;;  %v456_v13 = vsel %vm455_vm8, %v437_v26, %v454_v25 }
  0x5a   : > { %v458_v31 = vmul.f32 %v803_v14, %v456_v13 }
  0x5b   : > { %v506_v32 = vsel %vm455_vm8, %v502_v29, 0.0  ;;  %v507_v33 = vsel %vm455_vm8, %v503_v30, 0.0 }
  0x5c   : > { %v508_v36 = vadd.f32 %v507_v33, %v506_v32  ;;  %v460_v37 = vperm.slane %v458_v31, 0  ;;  %v461_v38 = vperm.slane %v458_v31, 1 }
  0x5e   : > { %509 = vadd.xlane.f32.xlu0 %v508_v36  ;;  %v464_v39 = vmul.f32 %v1128_v27, %v460_v37  ;;  %v465_v40 = vmul.f32 %v1130_v28, %v461_v38 }
  0x60   : > { %v544_v43 = vsel %vm1116_vm0, %v464_v39, 0.0  ;;  %v545_v44 = vsel %vm1120_vm1, %v465_v40, 0.0  ;;  %v553_v45 = vadd.f32 1.0, %v464_v39  ;;  %v554_v46 = vadd.f32 1.0, %v465_v40 }
  0x61   : > { %v546_v47 = vadd.f32 %v545_v44, %v544_v43 }
  0x62   : > { %v555_v27 = vsel %vm1116_vm0, %v553_v45, %v464_v39  ;;  %v556_v28 = vsel %vm1120_vm1, %v554_v46, %v465_v40 }
  0x63   : > { %547 = vadd.xlane.f32.xlu1 %v546_v47  ;;  %v557_v49 = vadd.f32 %v556_v28, %v555_v27 }
  0x66   : > { %531 = vadd.xlane.f32.xlu0 %v530_v48 }
  0x6b   : > { %558 = vadd.xlane.f32.xlu1 %v557_v49 }
  0xd1   : > { %v510_v23 = vpop.xlane.xlu0 %509 }
  0xd2   : > { %v511_v24 = vrot.slane %v510_v23, 4 }
  0xd4   : > { %v512_v50 = vadd.f32 %v511_v24, %v510_v23 }
  0xd6   : > { %v513_v51 = vrot.slane %v512_v50, 2  ;;  %v548_v62 = vpop.xlane.xlu1 %547 }
  0xd7   : > { %v549_v0 = vadd.f32 %v548_v62, %v543_v63 }
  0xd8   : > { %v514_v52 = vadd.f32 %v513_v51, %v512_v50 }
  0xd9   : > { %v532_v53 = vpop.xlane.xlu0 %531  ;;  %551 = vst.msk [vmem:[%s370_s8] sm:$0xff] %vm385_vm13, %v549_v0 }
  0xda   : > { %v533_v54 = vrot.slane %v532_v53, 4  ;;  %v515_v55 = vrot.slane %v514_v52, 1 }
  0xdc   : > { %v534_v56 = vadd.f32 %v533_v54, %v532_v53  ;;  %v516_v57 = vadd.f32 %v515_v55, %v514_v52 }
  0xde   : > { %v535_v58 = vrot.slane %v534_v56, 2  ;;  %807 = vpush %v516_v57  ;;  %v559_v1 = vpop.xlane.xlu1 %558 }
  0xdf   : > { %v560_v3 = vadd.f32 %v559_v1, %v552_v2 }
  0xe0   : > { %v536_v59 = vadd.f32 %v535_v58, %v534_v56 }
  0xe1   : > { %561 = vst.msk [vmem:[%s377_s11] sm:$0xff] %vm385_vm13, %v560_v3 }
  0xe2   : > { %v537_v60 = vrot.slane %v536_v59, 1 }
  0xe4   : > { %v538_v61 = vadd.f32 %v537_v60, %v536_v59 }
  0xe6   : > { %809 = vpush %v538_v61 }
 0x10f   : > { %s808_s21 = spop %807 }
 0x110   : > { %v518_v5 = vstv %s808_s21 }
 0x111   : > { %v519_v6 = vadd.f32 %v518_v5, %v500_v4 }
 0x113   : > { %521 = vst.msk [vmem:[%s1169_s15] sm:$0x1] %vm382_vm12, %v519_v6 }
 0x117   : > { %s810_s12 = spop %809 }
 0x118   : > { %v540_v8 = vstv %s810_s12 }
 0x119   : > { %v541_v9 = vadd.f32 %v540_v8, %v522_v7 }
 0x11b   : > { %542 = vst.msk [vmem:[%s1174_s26] sm:$0x1] %vm382_vm12, %v541_v9 }
 0x11c PF: > { %s22_s23 = sadd.s32 1, %s998_s23   ;;  %s1229_s18 = smov %s982_s19 }
 0x11d   : > { %p19_p0 = scmp.ge.s32.totalorder %s22_s23, 4   ;;  %s1230_s19 = smov %s986_s20 }
 0x11e   : > { %s1231_s20 = smov %s1080_s30  ;;  %s1232_s21 = smov %s994_s22 }
 0x11f   : > { %s1233_s22 = smov %s1235_s25  ;;  %21 = sbr.rel (!%p19_p0) target bundleno = 6 (0x6), region = 121 }
 0x124   :  { %643 = vsyncpa [#allocation3], 1 }
 0x125   :  { %645 = vsyncpa [#allocation3 + $0x1], 1 }
 0x126   :  { %646 = vsyncpa [#allocation5], 1 }
 0x127   :  { %648 = vsyncpa [#allocation5 + $0x1], 1 }

</bundles_post_ra>
